<compile_context>
chip_gen: v5e
topology: v5e:2x2
jax: 0.10.0
libtpu: 0.0.40
codegen_flags: <defaults>
</compile_context>

<pallas_src>
import functools

import jax
import jax.numpy as jnp
from jax.experimental import pallas as pl
from jax.experimental.pallas import tpu as pltpu


# ----------------------------------------------------------------------------
# Generation-aware VMEM budgets
# ----------------------------------------------------------------------------

def _vmem_capacity_bytes():
    try:
        info = pltpu.get_tpu_info()
        cap = int(getattr(info, "vmem_capacity_bytes", 0) or 0)
        if cap > 0:
            return cap
    except Exception:
        pass
    return 64 * 1024 * 1024  # conservative default (v7x per-TensorCore)


_VMEM_CAP = _vmem_capacity_bytes()
# Scoped-VMEM limit handed to Mosaic: ~5/8 of physical (40 MiB on v7x,
# 80 MiB on v5e/v6e), never above 96 MiB.
VMEM_LIMIT = int(min(_VMEM_CAP * 5 // 8, 96 * 1024 * 1024))
# Per-pipelined-block working-set budget (double-buffered inputs + outputs):
# 8 MiB on v7x, 16 MiB on v5e / v6e.
_BLOCK_BUDGET = int(min(_VMEM_CAP // 8, 16 * 1024 * 1024))

# HBM dtype for the wide intermediate activations (kernels compute in f32).
ACT_DTYPE = jnp.bfloat16


# ----------------------------------------------------------------------------
# Tiling helpers
# ----------------------------------------------------------------------------

def _round_up(x, m):
    return (x + m - 1) // m * m


def _pick_token_tile(n, bytes_per_token, cap=4096):
    """Token tile (multiple of 8) and padded token count for 1-D token grids."""
    per = max(1, int(bytes_per_token))
    max_t = max(8, min(cap, (_BLOCK_BUDGET // (2 * per)) // 8 * 8))
    best = 0
    t = 8
    while t <= min(n, max_t):
        if n % t == 0:
            best = t
        t += 8
    if best:
        return best, n
    # No usable divisor: pad the token axis instead of one giant block.
    t = max(8, min(max_t, _round_up(n, 8)))
    return t, _round_up(n, t)


def _pick_hw_tile(hw, bytes_per_token, cap=2048):
    """Largest multiple-of-8 divisor of hw whose block fits the budget."""
    per = max(1, int(bytes_per_token))
    max_t = max(8, min(cap, (_BLOCK_BUDGET // (2 * per)) // 8 * 8))
    best = 0
    t = 8
    while t <= min(hw, max_t):
        if hw % t == 0:
            best = t
        t += 8
    # TODO(synk): pad the token axis (as _pick_token_tile does) instead of
    # falling back to the full HW slab when HW has no suitable divisor.
    return best if best else hw


def _pick_row_tile(H, W, C, in_item, out_item):
    """Largest row tile dividing H whose dwconv working set fits the budget."""
    best = 1
    for th in range(1, H + 1):
        if H % th:
            continue
        blk = (2 * (th + 2) * (W + 2) * C * in_item      # halo double-buffer
               + 2 * th * W * C * out_item               # output double-buffer
               + 5 * (th + 2) * W * C * 4)               # f32 compute temps
        if blk <= _BLOCK_BUDGET:
            best = th
    return best


def _im2col_tokens(x_nhwc):
    """9-tap im2col for the tiny patch-embed conv only: (B*H*W, 9*Cin)."""
    B, H, W, C = x_nhwc.shape
    xp = jnp.pad(x_nhwc, ((0, 0), (1, 1), (1, 1), (0, 0)))
    taps = [xp[:, dy:dy + H, dx:dx + W, :] for dy in range(3) for dx in range(3)]
    return jnp.concatenate(taps, axis=-1).reshape(B * H * W, 9 * C)


# ----------------------------------------------------------------------------
# Pallas kernels
# ----------------------------------------------------------------------------

def _matmul_kernel(x_ref, w_ref, o_ref):
    # Plain token matmul: (TN, K) @ (K, Cout)  (used for the patch-embed conv).
    o_ref[...] = jnp.dot(x_ref[...].astype(jnp.float32), w_ref[...],
                         preferred_element_type=jnp.float32).astype(o_ref.dtype)


def _ln_matmul_kernel(x_ref, g_ref, b_ref, w_ref, o_ref):
    # WithBias LayerNorm (eps=1e-5, biased var) fused into a 1x1-conv matmul.
    x = x_ref[...].astype(jnp.float32)
    mu = jnp.mean(x, axis=-1, keepdims=True)
    var = jnp.mean(jnp.square(x - mu), axis=-1, keepdims=True)
    xn = (x - mu) * jax.lax.rsqrt(var + 1e-5) * g_ref[...] + b_ref[...]
    o_ref[...] = jnp.dot(xn, w_ref[...],
                         preferred_element_type=jnp.float32).astype(o_ref.dtype)


def _gate_matmul_residual_kernel(t_ref, r_ref, w_ref, o_ref):
    # o = (gelu(t[:, :hp]) * t[:, hp:]) @ w + r ; split is lane-aligned (hp%128==0).
    hidden_p = w_ref.shape[0]
    t = t_ref[...].astype(jnp.float32)
    x1 = t[:, :hidden_p]
    x2 = t[:, hidden_p:]
    g = 0.5 * x1 * (1.0 + jax.lax.erf(x1 * 0.7071067811865476))
    acc = jnp.dot(g * x2, w_ref[...], preferred_element_type=jnp.float32)
    o_ref[...] = (acc + r_ref[...].astype(jnp.float32)).astype(o_ref.dtype)


def _dwconv3x3_kernel(xpad_hbm, w_ref, o_ref, xbuf, sem):
    # Depthwise 3x3 conv with a manual, double-buffered row-halo DMA pipeline.
    #   xpad_hbm: (B, H+2, W+2, C) zero-padded input left in HBM (pl.ANY)
    #   w_ref:    (9, 1, C) taps        o_ref: (1, th, W, C) output block
    #   xbuf:     VMEM (2, th+2, W+2, C)    sem: DMA sems (2,)
    th = o_ref.shape[1]
    w_out = o_ref.shape[2]
    b = pl.program_id(0)
    i = pl.program_id(1)
    n_rb = pl.num_programs(1)

    def copy_for(block, slot):
        return pltpu.make_async_copy(
            xpad_hbm.at[b, pl.ds(block * th, th + 2)],
            xbuf.at[slot], sem.at[slot])

    @pl.when(i == 0)                       # prime the pipeline for this batch
    def _():
        copy_for(0, 0).start()

    @pl.when(i + 1 < n_rb)                 # prefetch next row block
    def _():
        copy_for(i + 1, (i + 1) % 2).start()

    slot = i % 2
    copy_for(i, slot).wait()

    buf = xbuf.at[slot]                    # (th+2, W+2, C) ref view
    wt = w_ref[...].astype(jnp.float32)    # (9, 1, C)
    # Pre-shift the three column views once; taps reuse them via cheap
    # leading-axis row slices.
    cols = [buf[:, dx:dx + w_out, :] for dx in range(3)]
    acc = None
    for dy in range(3):
        for dx in range(3):
            tap = cols[dx][dy:dy + th].astype(jnp.float32)
            term = tap * wt[dy * 3 + dx]
            acc = term if acc is None else acc + term
    o_ref[0] = acc.astype(o_ref.dtype)


def _attn_probs_kernel(yqkv_ref, xqkv_ref, temp_ref, p_ref,
                       gram_sc, qss_sc, kss_sc, *, heads):
    # Pass 1 of channel attention: accumulate the raw q^T k Gram matrix and
    # per-channel sum-of-squares over token tiles, then normalize / mask /
    # softmax once at the last token step.
    t = pl.program_id(1)
    dim = p_ref.shape[-1]

    @pl.when(t == 0)
    def _():
        gram_sc[...] = jnp.zeros_like(gram_sc)
        qss_sc[...] = jnp.zeros_like(qss_sc)
        kss_sc[...] = jnp.zeros_like(kss_sc)

    q = yqkv_ref[0, :, :dim].astype(jnp.float32)            # (tt, dim)
    k = xqkv_ref[0, :, dim:2 * dim].astype(jnp.float32)     # (tt, dim)
    gram_sc[...] += jax.lax.dot_general(
        q, k, (((0,), (0,)), ((), ())), preferred_element_type=jnp.float32)
    qss_sc[...] += jnp.sum(q * q, axis=0, keepdims=True)
    kss_sc[...] += jnp.sum(k * k, axis=0, keepdims=True)

    @pl.when(t == pl.num_programs(1) - 1)
    def _():
        c = dim // heads
        # F.normalize(dim=-1) in (head, c, hw) layout == per-channel L2 norm
        # over the token axis; applied post-hoc to the raw Gram matrix.
        qinv = jax.lax.rsqrt(jnp.maximum(qss_sc[...], 1e-24))   # (1, dim)
        kinv = jax.lax.rsqrt(jnp.maximum(kss_sc[...], 1e-24))   # (1, dim)
        # Row scale (q-channel norm * per-head temperature) as an outer
        # product with ones -- avoids a (1,dim)->(dim,1) transpose.
        row = jax.lax.dot_general(
            qinv * temp_ref[...], jnp.ones((1, dim), jnp.float32),
            (((0,), (0,)), ((), ())), preferred_element_type=jnp.float32)
        attn = gram_sc[...] * row * kinv                        # (dim, dim)
        ri = jax.lax.broadcasted_iota(jnp.int32, (dim, dim), 0) // c
        ci = jax.lax.broadcasted_iota(jnp.int32, (dim, dim), 1) // c
        attn = jnp.where(ri == ci, attn, -1e30)                 # head block mask
        attn = attn - jnp.max(attn, axis=-1, keepdims=True)
        e = jnp.exp(attn)
        p_ref[0] = (e / jnp.sum(e, axis=-1, keepdims=True)).astype(p_ref.dtype)


def _attn_out_kernel(xqkv_ref, p_ref, r_ref, w_ref, o_ref):
    # Pass 2: stream v token tiles: o = (v @ p^T) @ w_proj + y_residual.
    dim = o_ref.shape[-1]
    v = xqkv_ref[0, :, 2 * dim:].astype(jnp.float32)        # (tt, dim)
    p = p_ref[0]                                            # (dim, dim) f32
    out = jax.lax.dot_general(v, p, (((1,), (1,)), ((), ())),
                              preferred_element_type=jnp.float32)
    out = jnp.dot(out, w_ref[...], preferred_element_type=jnp.float32)
    o_ref[0] = (out + r_ref[0].astype(jnp.float32)).astype(o_ref.dtype)


# ----------------------------------------------------------------------------
# Pallas wrappers
# ----------------------------------------------------------------------------

def _token_matmul_call(kernel, out_cols, out_dtype, token_arrays, fixed_arrays,
                       fixed_specs, flops, tbytes, transcend=0):
    n = token_arrays[0].shape[0]
    bpt = (sum(int(a.shape[1]) * jnp.dtype(a.dtype).itemsize
               for a in token_arrays)
           + out_cols * jnp.dtype(out_dtype).itemsize)
    tn, n_pad = _pick_token_tile(n, bpt)
    if n_pad != n:
        token_arrays = [jnp.pad(a, ((0, n_pad - n), (0, 0)))
                        for a in token_arrays]
    in_specs = [pl.BlockSpec((tn, int(a.shape[1])), lambda i: (i, 0))
                for a in token_arrays] + list(fixed_specs)
    out = pl.pallas_call(
        kernel,
        out_shape=jax.ShapeDtypeStruct((n_pad, out_cols), out_dtype),
        grid=(n_pad // tn,),
        in_specs=in_specs,
        out_specs=pl.BlockSpec((tn, out_cols), lambda i: (i, 0)),
        compiler_params=pltpu.CompilerParams(
            dimension_semantics=("parallel",),
            vmem_limit_bytes=VMEM_LIMIT),
        cost_estimate=pl.CostEstimate(flops=int(flops),
                                      transcendentals=int(transcend),
                                      bytes_accessed=int(tbytes)),
    )(*token_arrays, *fixed_arrays)
    return out if n_pad == n else out[:n]


def embed_conv3x3(x_nhwc, w, out_dtype=jnp.float32):
    """OverlapPatchEmbed: 3x3 conv as one fused K=9*Cin matmul on tokens."""
    B, H, W, Cin = x_nhwc.shape
    Cout = w.shape[-1]
    tokens = _im2col_tokens(x_nhwc)                     # (N, 9*Cin)
    w2 = w.reshape(9 * Cin, Cout)
    N, K = tokens.shape
    return _token_matmul_call(
        _matmul_kernel, Cout, out_dtype, [tokens], [w2],
        [pl.BlockSpec((K, Cout), lambda i: (0, 0))],
        flops=2 * N * K * Cout,
        tbytes=4 * (N * K + K * Cout + N * Cout))


def ln_matmul(x_tok, gamma, beta, w, out_dtype):
    """LayerNorm (WithBias) fused into a 1x1-conv matmul."""
    N, C = x_tok.shape
    Cout = w.shape[-1]
    fixed = [gamma.reshape(1, C), beta.reshape(1, C), w]
    fixed_specs = [pl.BlockSpec((1, C), lambda i: (0, 0)),
                   pl.BlockSpec((1, C), lambda i: (0, 0)),
                   pl.BlockSpec((C, Cout), lambda i: (0, 0))]
    return _token_matmul_call(
        _ln_matmul_kernel, Cout, out_dtype, [x_tok], fixed, fixed_specs,
        flops=2 * N * C * Cout, transcend=N,
        tbytes=(N * C * x_tok.dtype.itemsize + 4 * (2 * C + C * Cout)
                + N * Cout * jnp.dtype(out_dtype).itemsize))


def gate_matmul_residual(t_tok, res_tok, w, out_dtype=jnp.float32):
    """FFN GELU gate + project_out + residual, split at a lane boundary."""
    N, C2 = t_tok.shape
    hidden_p, Cout = w.shape
    fixed_specs = [pl.BlockSpec((hidden_p, Cout), lambda i: (0, 0))]
    return _token_matmul_call(
        _gate_matmul_residual_kernel, Cout, out_dtype, [t_tok, res_tok], [w],
        fixed_specs,
        flops=2 * N * hidden_p * Cout, transcend=N * hidden_p,
        tbytes=(N * C2 * t_tok.dtype.itemsize + 4 * hidden_p * Cout
                + N * Cout * (res_tok.dtype.itemsize
                              + jnp.dtype(out_dtype).itemsize)))


def dwconv3x3(x_nhwc, w, out_dtype=None):
    """Depthwise 3x3 conv (stride 1, pad 1, no bias) with manual halo DMA."""
    B, H, W, C = x_nhwc.shape
    out_dtype = out_dtype or x_nhwc.dtype
    xpad = jnp.pad(x_nhwc, ((0, 0), (1, 1), (1, 1), (0, 0)))   # (B,H+2,W+2,C)
    w9 = w.reshape(9, 1, C).astype(jnp.float32)
    in_item = jnp.dtype(x_nhwc.dtype).itemsize
    out_item = jnp.dtype(out_dtype).itemsize
    th = _pick_row_tile(H, W, C, in_item, out_item)
    return pl.pallas_call(
        _dwconv3x3_kernel,
        out_shape=jax.ShapeDtypeStruct((B, H, W, C), out_dtype),
        grid=(B, H // th),
        in_specs=[pl.BlockSpec(memory_space=pl.ANY),
                  pl.BlockSpec((9, 1, C), lambda b, i: (0, 0, 0))],
        out_specs=pl.BlockSpec((1, th, W, C), lambda b, i: (b, i, 0, 0)),
        scratch_shapes=[pltpu.VMEM((2, th + 2, W + 2, C), x_nhwc.dtype),
                        pltpu.SemaphoreType.DMA((2,))],
        compiler_params=pltpu.CompilerParams(
            dimension_semantics=("parallel", "arbitrary"),
            vmem_limit_bytes=VMEM_LIMIT),
        cost_estimate=pl.CostEstimate(
            flops=int(18 * B * H * W * C), transcendentals=0,
            bytes_accessed=int(in_item * B * (H + 2) * (W + 2) * C
                               + out_item * B * H * W * C)),
    )(xpad, w9)


def channel_attention_project(qkv_all, tok_all, w_proj, temp_per_channel,
                              heads, out_dtype=jnp.float32):
    """Channel attention + fused project_out + residual.

    qkv_all: (2B, HW, 3*dim)  -- x batch entries [0, B), y batch entries [B, 2B)
    tok_all: (2B, HW, dim)    -- patch-embed tokens (y half is the residual)
    Returns  (B, HW, dim)  ==  y_tok + project_out(attention(x_qkv, y_qkv)).
    """
    twoB, HW, C3 = qkv_all.shape
    B = twoB // 2
    dim = C3 // 3
    item = jnp.dtype(qkv_all.dtype).itemsize

    # Pass 1: (B, dim, dim) attention probabilities, reducing over token tiles.
    tt = _pick_hw_tile(HW, 2 * C3 * item)
    probs = pl.pallas_call(
        functools.partial(_attn_probs_kernel, heads=heads),
        out_shape=jax.ShapeDtypeStruct((B, dim, dim), jnp.float32),
        grid=(B, HW // tt),
        in_specs=[
            pl.BlockSpec((1, tt, C3), lambda b, t: (b + B, t, 0)),   # y -> q
            pl.BlockSpec((1, tt, C3), lambda b, t: (b, t, 0)),       # x -> k
            pl.BlockSpec((1, dim), lambda b, t: (0, 0)),
        ],
        out_specs=pl.BlockSpec((1, dim, dim), lambda b, t: (b, 0, 0)),
        scratch_shapes=[pltpu.VMEM((dim, dim), jnp.float32),
                        pltpu.VMEM((1, dim), jnp.float32),
                        pltpu.VMEM((1, dim), jnp.float32)],
        compiler_params=pltpu.CompilerParams(
            dimension_semantics=("parallel", "arbitrary"),
            vmem_limit_bytes=VMEM_LIMIT),
        cost_estimate=pl.CostEstimate(
            flops=int(4 * B * HW * dim * dim),
            transcendentals=int(B * dim * dim),
            bytes_accessed=int(2 * B * HW * C3 * item + 4 * B * dim * dim)),
    )(qkv_all, qkv_all, temp_per_channel)

    # Pass 2: out = (v @ p^T) @ w_proj + y_tok, streamed over token tiles.
    tt2 = _pick_hw_tile(HW, C3 * item + 2 * dim * 4)
    out = pl.pallas_call(
        _attn_out_kernel,
        out_shape=jax.ShapeDtypeStruct((B, HW, dim), out_dtype),
        grid=(B, HW // tt2),
        in_specs=[
            pl.BlockSpec((1, tt2, C3), lambda b, t: (b, t, 0)),       # x -> v
            pl.BlockSpec((1, dim, dim), lambda b, t: (b, 0, 0)),
            pl.BlockSpec((1, tt2, dim), lambda b, t: (b + B, t, 0)),  # residual
            pl.BlockSpec((dim, dim), lambda b, t: (0, 0)),
        ],
        out_specs=pl.BlockSpec((1, tt2, dim), lambda b, t: (b, t, 0)),
        compiler_params=pltpu.CompilerParams(
            dimension_semantics=("parallel", "parallel"),
            vmem_limit_bytes=VMEM_LIMIT),
        cost_estimate=pl.CostEstimate(
            flops=int(4 * B * HW * dim * dim), transcendentals=0,
            bytes_accessed=int(B * HW * (C3 * item + 2 * dim * 4)
                               + 4 * B * dim * dim)),
    )(qkv_all, probs, tok_all, w_proj)
    return out


# ----------------------------------------------------------------------------
# Model (parameter init + forward glue)
# ----------------------------------------------------------------------------

def init_params(key, inp_channels, dim, heads, ffn_expansion_factor=2.66):
    hidden = int(dim * ffn_expansion_factor)
    hidden_p = max(128, _round_up(hidden, 128))     # lane-aligned gate split
    keys = jax.random.split(key, 7)

    def w(k, shape, fan_in):
        return (jax.random.normal(k, shape, jnp.float32)
                / jnp.sqrt(jnp.float32(fan_in)))

    w_in = w(keys[4], (dim, 2 * hidden), dim)
    w_dw = w(keys[5], (3, 3, 2 * hidden), 9)
    w_out = w(keys[6], (hidden, dim), hidden)

    # Zero-pad the FFN hidden axis up to hidden_p: padded channels carry exact
    # zeros through project_in -> dwconv -> gelu-gate -> project_out, so the
    # math is unchanged while the gate split lands on a 128-lane boundary.
    w_in_p = jnp.zeros((dim, 2 * hidden_p), jnp.float32)
    w_in_p = w_in_p.at[:, :hidden].set(w_in[:, :hidden])
    w_in_p = w_in_p.at[:, hidden_p:hidden_p + hidden].set(w_in[:, hidden:])
    w_dw_p = jnp.zeros((3, 3, 2 * hidden_p), jnp.float32)
    w_dw_p = w_dw_p.at[:, :, :hidden].set(w_dw[:, :, :hidden])
    w_dw_p = w_dw_p.at[:, :, hidden_p:hidden_p + hidden].set(w_dw[:, :, hidden:])
    w_out_p = jnp.zeros((hidden_p, dim), jnp.float32)
    w_out_p = w_out_p.at[:hidden].set(w_out)

    return {
        # OverlapPatchEmbed: Conv2d(in_c, dim, 3, pad=1, bias=False)
        'w_embed': w(keys[0], (3, 3, inp_channels, dim), 9 * inp_channels),
        # Attention
        'w_qkv': w(keys[1], (dim, 3 * dim), dim),           # 1x1 conv
        'w_qkv_dw': w(keys[2], (3, 3, 3 * dim), 9),         # depthwise 3x3
        'w_proj_out': w(keys[3], (dim, dim), dim),          # 1x1 conv
        'temperature': jnp.ones((heads,), jnp.float32),
        # LayerNorms (WithBias)
        'ln1_w': jnp.ones((dim,), jnp.float32),
        'ln1_b': jnp.zeros((dim,), jnp.float32),
        'ln2_w': jnp.ones((dim,), jnp.float32),
        'ln2_b': jnp.zeros((dim,), jnp.float32),
        # FeedForward (hidden padded to hidden_p)
        'w_ffn_in': w_in_p,
        'w_ffn_dw': w_dw_p,
        'w_ffn_out': w_out_p,
    }


def restormer_forward(X_nchw, Y_nchw, p, heads):
    B, Cin, H, W = X_nchw.shape
    dim = p['w_embed'].shape[-1]
    hp2 = p['w_ffn_in'].shape[-1]                   # 2 * hidden_p
    N = B * H * W

    x_nhwc = jnp.transpose(X_nchw, (0, 2, 3, 1))
    y_nhwc = jnp.transpose(Y_nchw, (0, 2, 3, 1))
    xy_nhwc = jnp.concatenate([x_nhwc, y_nhwc], axis=0)      # (2B, H, W, Cin)

    # OverlapPatchEmbed (shared weights -> single call over the 2B batch).
    tok_all = embed_conv3x3(xy_nhwc, p['w_embed'])           # (2B*HW, dim) f32

    # ---- TransformerBlock: x1 = y + proj(attn(norm1(x), norm1(y))) ----
    qkv = ln_matmul(tok_all, p['ln1_w'], p['ln1_b'], p['w_qkv'], ACT_DTYPE)
    qkv = dwconv3x3(qkv.reshape(2 * B, H, W, 3 * dim), p['w_qkv_dw'])
    temp_pc = jnp.repeat(p['temperature'], dim // heads).reshape(1, dim)

    x1 = channel_attention_project(
        qkv.reshape(2 * B, H * W, 3 * dim),
        tok_all.reshape(2 * B, H * W, dim),
        p['w_proj_out'], temp_pc, heads)                     # (B, HW, dim) f32
    x1 = x1.reshape(N, dim)

    # ---- out = x1 + ffn(norm2(x1)) ----
    t = ln_matmul(x1, p['ln2_w'], p['ln2_b'], p['w_ffn_in'], ACT_DTYPE)
    t = dwconv3x3(t.reshape(B, H, W, hp2), p['w_ffn_dw'])
    out_tok = gate_matmul_residual(t.reshape(N, hp2), x1, p['w_ffn_out'])

    out = out_tok.reshape(B, H, W, dim)
    return jnp.transpose(out, (0, 3, 1, 2))                  # back to NCHW


if __name__ == "__main__":
    B, Cin, H, W = 2, 3, 16, 16
    dim, heads = 16, 4

    key = jax.random.PRNGKey(0)
    kx, ky, kp = jax.random.split(key, 3)
    X = jax.random.normal(kx, (B, Cin, H, W), jnp.float32)
    Y = jax.random.normal(ky, (B, Cin, H, W), jnp.float32)
    params = init_params(kp, Cin, dim, heads, 2.66)

    out = jax.block_until_ready(restormer_forward(X, Y, params, heads))
    assert out.shape == (B, dim, H, W), out.shape
    assert bool(jnp.all(jnp.isfinite(out)))
    print("KERNEL_OK")
</pallas_src>

<mosaic_0001>
module attributes {stable_mosaic.version = 11 : i64} {
  func.func @_matmul_kernel(%arg0: i32, %arg1: memref<1024x27xf32, #tpu.memory_space<vmem>>, %arg2: memref<27x16xf32, #tpu.memory_space<vmem>>, %arg3: memref<1024x16xf32, #tpu.memory_space<vmem>>) attributes {dimension_semantics = [#tpu.dimension_semantics<parallel>], iteration_bounds = array<i64: 1>, scalar_prefetch = 0 : i64, scratch_operands = 0 : i64, tpu.core_type = #tpu.core_type<tc>, window_params = [{transform_indices = @transform_0, window_bounds = array<i64: 1024, 27>}, {pipeline_mode = #tpu.pipeline_mode<synchronous>, transform_indices = @transform_1, window_bounds = array<i64: 27, 16>}, {transform_indices = @transform_2, window_bounds = array<i64: 1024, 16>}]} {
    %c0 = arith.constant 0 : index
    %c0_0 = arith.constant 0 : index
    %0 = vector.load %arg1[%c0, %c0_0] : memref<1024x27xf32, #tpu.memory_space<vmem>>, vector<1024x27xf32>
    %c0_1 = arith.constant 0 : index
    %c0_2 = arith.constant 0 : index
    %1 = vector.load %arg2[%c0_1, %c0_2] : memref<27x16xf32, #tpu.memory_space<vmem>>, vector<27x16xf32>
    %cst = arith.constant dense<0.000000e+00> : vector<1024x16xf32>
    %2 = tpu.matmul %0, %1, %cst {dimension_numbers = #tpu.dot_dimension_numbers<[1], [0], [0], [1], [0, 0, 1, 1], [], []>} : vector<1024x27xf32>, vector<27x16xf32>, vector<1024x16xf32> -> vector<1024x16xf32>
    %c0_3 = arith.constant 0 : index
    %c0_4 = arith.constant 0 : index
    %3 = vector.load %arg3[%c0_3, %c0_4] : memref<1024x16xf32, #tpu.memory_space<vmem>>, vector<1024x16xf32>
    tpu.vector_store %arg3[%c0_3, %c0_4], %2 {strides = array<i32>} : memref<1024x16xf32, #tpu.memory_space<vmem>>, vector<1024x16xf32>,
    return
  }
  func.func @transform_0(%arg0: i32) -> (i32, i32) {
    %c0_i32 = arith.constant 0 : i32
    %c0_i32_0 = arith.constant 0 : i32
    return %arg0, %c0_i32 : i32, i32
  }
  func.func @transform_1(%arg0: i32) -> (i32, i32) {
    %c0_i32 = arith.constant 0 : i32
    %c0_i32_0 = arith.constant 0 : i32
    %c0_i32_1 = arith.constant 0 : i32
    return %c0_i32, %c0_i32_0 : i32, i32
  }
  func.func @transform_2(%arg0: i32) -> (i32, i32) {
    %c0_i32 = arith.constant 0 : i32
    %c0_i32_0 = arith.constant 0 : i32
    return %arg0, %c0_i32 : i32, i32
  }
}

</mosaic_0001>

<bundles_post_ra>
// kernel: tpu_custom_call.1
= control target key start
LH: loop header
LB: loop body
LE: loop exit
PB: predicated region body
PF: predicated region fallthrough
CT: control target
= control target key end

     0   :  { %vm528_vm0 = vcmask 1042432   ;;  %vm143_vm1 = vcmask 220160   ;;  %vm933_vm2 = vcmask 130048   ;;  %s2258_s1 = inlined_call_operand.vmem [shape: f32[27,16], index: 1, kind: input, shape index: {}]   ;;  %s2259_s0 = inlined_call_operand.vmem [shape: f32[1024,27], index: 0, kind: input, shape index: {}]   ;;  %s2260_s2 = inlined_call_operand.vmem [shape: f32[1024,16], index: 2, kind: output, shape index: {}]  }
   0x1   :  { %v142_v0 = vld [vmem:[%s2258_s1 + $0x18] sm:$0x7]  ;;  %v141_v1 = vld [vmem:[%s2258_s1 + $0x10] sm:$0xff]  ;;  %v140_v2 = vld [vmem:[%s2258_s1 + $0x8] sm:$0xff] }
   0x2   :  { %1196 = vmatpush.msk.msra.mxu2 %vm528_vm0, %v142_v0  ;;  %1197 = vmatpush.msk.msra.mxu3 %vm528_vm0, %v142_v0  ;;  %v139_v3 = vld [vmem:[%s2258_s1] sm:$0xff]  ;;  %v76_v8 = vld [vmem:[%s2259_s0 + $0x208] sm:$0xff]  ;;  %v77_v12 = vld [vmem:[%s2259_s0 + $0x210] sm:$0xff] }
   0x3   :  { %1066 = vmatpush.msk.msra.mxu0 %vm528_vm0, %v142_v0  ;;  %1195 = vmatpush.msk.msra.mxu1 %vm528_vm0, %v142_v0  ;;  %v75_v4 = vld [vmem:[%s2259_s0 + $0x200] sm:$0xff]  ;;  %v108_v9 = vld [vmem:[%s2259_s0 + $0x308] sm:$0xff]  ;;  %v109_v13 = vld [vmem:[%s2259_s0 + $0x310] sm:$0xff] }
   0x4   :  { %1199 = vmatpush.msra.mxu2 %v141_v1  ;;  %1200 = vmatpush.msra.mxu3 %v141_v1  ;;  %v107_v5 = vld [vmem:[%s2259_s0 + $0x300] sm:$0xff]  ;;  %v12_v10 = vld [vmem:[%s2259_s0 + $0x8] sm:$0xff]  ;;  %v13_v14 = vld [vmem:[%s2259_s0 + $0x10] sm:$0xff] }
   0x5   :  { %545 = vmatpush.msra.mxu0 %v141_v1  ;;  %1198 = vmatpush.msra.mxu1 %v141_v1  ;;  %v11_v6 = vld [vmem:[%s2259_s0] sm:$0xff]  ;;  %v44_v11 = vld [vmem:[%s2259_s0 + $0x108] sm:$0xff]  ;;  %v45_v15 = vld [vmem:[%s2259_s0 + $0x110] sm:$0xff] }
   0x6   :  { %1202 = vmatpush.msra.mxu2 %v140_v2  ;;  %1203 = vmatpush.msra.mxu3 %v140_v2  ;;  %v43_v7 = vld [vmem:[%s2259_s0 + $0x100] sm:$0xff]  ;;  %v78_v16 = vld [vmem:[%s2259_s0 + $0x218] sm:$0xff]  ;;  %v80_v24 = vld [vmem:[%s2259_s0 + $0x228] sm:$0xff] }
   0x7   :  { %546 = vmatpush.msra.mxu0 %v140_v2  ;;  %1201 = vmatpush.msra.mxu1 %v140_v2  ;;  %v110_v17 = vld [vmem:[%s2259_s0 + $0x318] sm:$0xff]  ;;  %v79_v20 = vld [vmem:[%s2259_s0 + $0x220] sm:$0xff]  ;;  %v112_v25 = vld [vmem:[%s2259_s0 + $0x328] sm:$0xff] }
   0x8   :  { %1205 = vmatpush.msra.mxu2 %v139_v3  ;;  %1206 = vmatpush.msra.mxu3 %v139_v3  ;;  %v14_v18 = vld [vmem:[%s2259_s0 + $0x18] sm:$0xff]  ;;  %v111_v21 = vld [vmem:[%s2259_s0 + $0x320] sm:$0xff]  ;;  %v16_v26 = vld [vmem:[%s2259_s0 + $0x28] sm:$0xff] }
   0x9   :  { %1131 = vmatmul.msk.f32.vlgmr.msra.gmra.mxu2 %vm143_vm1, %v75_v4  ;;  %1163 = vmatmul.msk.f32.vlgmr.msra.gmra.mxu3 %vm143_vm1, %v107_v5  ;;  %v46_v19 = vld [vmem:[%s2259_s0 + $0x118] sm:$0xff]  ;;  %v15_v22 = vld [vmem:[%s2259_s0 + $0x20] sm:$0xff]  ;;  %v48_v27 = vld [vmem:[%s2259_s0 + $0x128] sm:$0xff] }
   0xa   :  { %547 = vmatpush.msra.mxu0 %v139_v3  ;;  %1204 = vmatpush.msra.mxu1 %v139_v3  ;;  %v47_v23 = vld [vmem:[%s2259_s0 + $0x120] sm:$0xff]  ;;  %v81_v28 = vld [vmem:[%s2259_s0 + $0x230] sm:$0xff]  ;;  %v82_v32 = vld [vmem:[%s2259_s0 + $0x238] sm:$0xff] }
   0xb   :  { %1067 = vmatmul.msk.f32.vlgmr.msra.gmra.mxu0 %vm143_vm1, %v11_v6  ;;  %1099 = vmatmul.msk.f32.vlgmr.msra.gmra.mxu1 %vm143_vm1, %v43_v7  ;;  %v113_v29 = vld [vmem:[%s2259_s0 + $0x330] sm:$0xff]  ;;  %v114_v33 = vld [vmem:[%s2259_s0 + $0x338] sm:$0xff]  ;;  %v83_v36 = vld [vmem:[%s2259_s0 + $0x240] sm:$0xff] }
   0xc   :  { %v17_v30 = vld [vmem:[%s2259_s0 + $0x30] sm:$0xff]  ;;  %v18_v34 = vld [vmem:[%s2259_s0 + $0x38] sm:$0xff]  ;;  %v115_v37 = vld [vmem:[%s2259_s0 + $0x340] sm:$0xff] }
   0xd   :  { %v49_v31 = vld [vmem:[%s2259_s0 + $0x130] sm:$0xff]  ;;  %v50_v35 = vld [vmem:[%s2259_s0 + $0x138] sm:$0xff]  ;;  %v19_v38 = vld [vmem:[%s2259_s0 + $0x40] sm:$0xff] }
   0xe   :  { %v51_v39 = vld [vmem:[%s2259_s0 + $0x140] sm:$0xff]  ;;  %v84_v40 = vld [vmem:[%s2259_s0 + $0x248] sm:$0xff]  ;;  %v85_v44 = vld [vmem:[%s2259_s0 + $0x250] sm:$0xff] }
   0xf   :  { %v116_v41 = vld [vmem:[%s2259_s0 + $0x348] sm:$0xff]  ;;  %v117_v45 = vld [vmem:[%s2259_s0 + $0x350] sm:$0xff]  ;;  %v86_v48 = vld [vmem:[%s2259_s0 + $0x258] sm:$0xff] }
  0x10   :  { %v20_v42 = vld [vmem:[%s2259_s0 + $0x48] sm:$0xff]  ;;  %v21_v46 = vld [vmem:[%s2259_s0 + $0x50] sm:$0xff]  ;;  %v118_v49 = vld [vmem:[%s2259_s0 + $0x358] sm:$0xff] }
  0x11   :  { %1132 = vmatmul.msk.f32.gmra.mxu2 %vm143_vm1, %v76_v8  ;;  %1164 = vmatmul.msk.f32.gmra.mxu3 %vm143_vm1, %v108_v9  ;;  %v52_v43 = vld [vmem:[%s2259_s0 + $0x148] sm:$0xff]  ;;  %v53_v47 = vld [vmem:[%s2259_s0 + $0x150] sm:$0xff]  ;;  %v22_v50 = vld [vmem:[%s2259_s0 + $0x58] sm:$0xff] }
  0x12   :  { %v54_v51 = vld [vmem:[%s2259_s0 + $0x158] sm:$0xff]  ;;  %v87_v52 = vld [vmem:[%s2259_s0 + $0x260] sm:$0xff]  ;;  %v88_v56 = vld [vmem:[%s2259_s0 + $0x268] sm:$0xff] }
  0x13   :  { %1068 = vmatmul.msk.f32.gmra.mxu0 %vm143_vm1, %v12_v10  ;;  %1100 = vmatmul.msk.f32.gmra.mxu1 %vm143_vm1, %v44_v11  ;;  %v119_v53 = vld [vmem:[%s2259_s0 + $0x360] sm:$0xff]  ;;  %v120_v57 = vld [vmem:[%s2259_s0 + $0x368] sm:$0xff]  ;;  %v89_v60 = vld [vmem:[%s2259_s0 + $0x270] sm:$0xff] }
  0x14   :  { %v23_v54 = vld [vmem:[%s2259_s0 + $0x60] sm:$0xff]  ;;  %v24_v58 = vld [vmem:[%s2259_s0 + $0x68] sm:$0xff]  ;;  %v121_v61 = vld [vmem:[%s2259_s0 + $0x370] sm:$0xff] }
  0x15   :  { %v55_v55 = vld [vmem:[%s2259_s0 + $0x160] sm:$0xff]  ;;  %v56_v59 = vld [vmem:[%s2259_s0 + $0x168] sm:$0xff]  ;;  %v25_v62 = vld [vmem:[%s2259_s0 + $0x70] sm:$0xff] }
  0x16   :  { %v57_v63 = vld [vmem:[%s2259_s0 + $0x170] sm:$0xff]  ;;  %v90_v0 = vld [vmem:[%s2259_s0 + $0x278] sm:$0xff]  ;;  %v91_v4 = vld [vmem:[%s2259_s0 + $0x280] sm:$0xff] }
  0x17   :  { %v122_v1 = vld [vmem:[%s2259_s0 + $0x378] sm:$0xff]  ;;  %v123_v5 = vld [vmem:[%s2259_s0 + $0x380] sm:$0xff] }
  0x18   :  { %v26_v2 = vld [vmem:[%s2259_s0 + $0x78] sm:$0xff]  ;;  %v27_v8 = vld [vmem:[%s2259_s0 + $0x80] sm:$0xff] }
  0x19   :  { %1133 = vmatmul.msk.f32.gmra.mxu2 %vm143_vm1, %v77_v12  ;;  %1165 = vmatmul.msk.f32.gmra.mxu3 %vm143_vm1, %v109_v13  ;;  %v58_v3 = vld [vmem:[%s2259_s0 + $0x178] sm:$0xff]  ;;  %v59_v9 = vld [vmem:[%s2259_s0 + $0x180] sm:$0xff]  ;;  %v92_v12 = vld [vmem:[%s2259_s0 + $0x288] sm:$0xff] }
  0x1a   :  { %v124_v13 = vld [vmem:[%s2259_s0 + $0x388] sm:$0xff] }
  0x1b   :  { %1069 = vmatmul.msk.f32.gmra.mxu0 %vm143_vm1, %v13_v14  ;;  %1101 = vmatmul.msk.f32.gmra.mxu1 %vm143_vm1, %v45_v15 }
  0x21   :  { %1134 = vmatmul.msk.f32.gmra.mxu2 %vm143_vm1, %v78_v16  ;;  %1166 = vmatmul.msk.f32.gmra.mxu3 %vm143_vm1, %v110_v17  ;;  %v28_v16 = vld [vmem:[%s2259_s0 + $0x88] sm:$0xff] }
  0x22   :  { %v60_v17 = vld [vmem:[%s2259_s0 + $0x188] sm:$0xff] }
  0x23   :  { %1070 = vmatmul.msk.f32.gmra.mxu0 %vm143_vm1, %v14_v18  ;;  %1102 = vmatmul.msk.f32.gmra.mxu1 %vm143_vm1, %v46_v19 }
  0x29   :  { %1135 = vmatmul.msk.f32.gmra.mxu2 %vm143_vm1, %v79_v20  ;;  %1167 = vmatmul.msk.f32.gmra.mxu3 %vm143_vm1, %v111_v21  ;;  %v93_v20 = vld [vmem:[%s2259_s0 + $0x290] sm:$0xff] }
  0x2a   :  { %v125_v21 = vld [vmem:[%s2259_s0 + $0x390] sm:$0xff] }
  0x2b   :  { %1071 = vmatmul.msk.f32.gmra.mxu0 %vm143_vm1, %v15_v22  ;;  %1103 = vmatmul.msk.f32.gmra.mxu1 %vm143_vm1, %v47_v23 }
  0x31   :  { %1136 = vmatmul.msk.f32.gmra.mxu2 %vm143_vm1, %v80_v24  ;;  %1168 = vmatmul.msk.f32.gmra.mxu3 %vm143_vm1, %v112_v25  ;;  %v29_v24 = vld [vmem:[%s2259_s0 + $0x90] sm:$0xff] }
  0x32   :  { %v61_v25 = vld [vmem:[%s2259_s0 + $0x190] sm:$0xff] }
  0x33   :  { %1072 = vmatmul.msk.f32.gmra.mxu0 %vm143_vm1, %v16_v26  ;;  %1104 = vmatmul.msk.f32.gmra.mxu1 %vm143_vm1, %v48_v27 }
  0x39   :  { %1137 = vmatmul.msk.f32.gmra.mxu2 %vm143_vm1, %v81_v28  ;;  %1169 = vmatmul.msk.f32.gmra.mxu3 %vm143_vm1, %v113_v29  ;;  %v94_v28 = vld [vmem:[%s2259_s0 + $0x298] sm:$0xff] }
  0x3a   :  { %v126_v29 = vld [vmem:[%s2259_s0 + $0x398] sm:$0xff] }
  0x3b   :  { %1073 = vmatmul.msk.f32.gmra.mxu0 %vm143_vm1, %v17_v30  ;;  %1105 = vmatmul.msk.f32.gmra.mxu1 %vm143_vm1, %v49_v31 }
  0x41   :  { %1138 = vmatmul.msk.f32.gmra.mxu2 %vm143_vm1, %v82_v32  ;;  %1170 = vmatmul.msk.f32.gmra.mxu3 %vm143_vm1, %v114_v33  ;;  %v30_v32 = vld [vmem:[%s2259_s0 + $0x98] sm:$0xff] }
  0x42   :  { %v62_v33 = vld [vmem:[%s2259_s0 + $0x198] sm:$0xff] }
  0x43   :  { %1074 = vmatmul.msk.f32.gmra.mxu0 %vm143_vm1, %v18_v34  ;;  %1106 = vmatmul.msk.f32.gmra.mxu1 %vm143_vm1, %v50_v35 }
  0x49   :  { %1139 = vmatmul.msk.f32.gmra.mxu2 %vm143_vm1, %v83_v36  ;;  %1171 = vmatmul.msk.f32.gmra.mxu3 %vm143_vm1, %v115_v37  ;;  %v95_v36 = vld [vmem:[%s2259_s0 + $0x2a0] sm:$0xff] }
  0x4a   :  { %v127_v37 = vld [vmem:[%s2259_s0 + $0x3a0] sm:$0xff] }
  0x4b   :  { %1075 = vmatmul.msk.f32.gmra.mxu0 %vm143_vm1, %v19_v38  ;;  %1107 = vmatmul.msk.f32.gmra.mxu1 %vm143_vm1, %v51_v39 }
  0x51   :  { %1140 = vmatmul.msk.f32.gmra.mxu2 %vm143_vm1, %v84_v40  ;;  %1172 = vmatmul.msk.f32.gmra.mxu3 %vm143_vm1, %v116_v41  ;;  %v31_v40 = vld [vmem:[%s2259_s0 + $0xa0] sm:$0xff] }
  0x52   :  { %v63_v41 = vld [vmem:[%s2259_s0 + $0x1a0] sm:$0xff] }
  0x53   :  { %1076 = vmatmul.msk.f32.gmra.mxu0 %vm143_vm1, %v20_v42  ;;  %1108 = vmatmul.msk.f32.gmra.mxu1 %vm143_vm1, %v52_v43 }
  0x59   :  { %1141 = vmatmul.msk.f32.gmra.mxu2 %vm143_vm1, %v85_v44  ;;  %1173 = vmatmul.msk.f32.gmra.mxu3 %vm143_vm1, %v117_v45  ;;  %v96_v44 = vld [vmem:[%s2259_s0 + $0x2a8] sm:$0xff] }
  0x5a   :  { %v128_v45 = vld [vmem:[%s2259_s0 + $0x3a8] sm:$0xff] }
  0x5b   :  { %1077 = vmatmul.msk.f32.gmra.mxu0 %vm143_vm1, %v21_v46  ;;  %1109 = vmatmul.msk.f32.gmra.mxu1 %vm143_vm1, %v53_v47 }
  0x61   :  { %1142 = vmatmul.msk.f32.gmra.mxu2 %vm143_vm1, %v86_v48  ;;  %1174 = vmatmul.msk.f32.gmra.mxu3 %vm143_vm1, %v118_v49  ;;  %v32_v48 = vld [vmem:[%s2259_s0 + $0xa8] sm:$0xff] }
  0x62   :  { %v64_v49 = vld [vmem:[%s2259_s0 + $0x1a8] sm:$0xff] }
  0x63   :  { %1078 = vmatmul.msk.f32.gmra.mxu0 %vm143_vm1, %v22_v50  ;;  %1110 = vmatmul.msk.f32.gmra.mxu1 %vm143_vm1, %v54_v51 }
  0x69   :  { %1143 = vmatmul.msk.f32.gmra.mxu2 %vm143_vm1, %v87_v52  ;;  %1175 = vmatmul.msk.f32.gmra.mxu3 %vm143_vm1, %v119_v53  ;;  %v97_v52 = vld [vmem:[%s2259_s0 + $0x2b0] sm:$0xff] }
  0x6a   :  { %v129_v53 = vld [vmem:[%s2259_s0 + $0x3b0] sm:$0xff] }
  0x6b   :  { %1079 = vmatmul.msk.f32.gmra.mxu0 %vm143_vm1, %v23_v54  ;;  %1111 = vmatmul.msk.f32.gmra.mxu1 %vm143_vm1, %v55_v55 }
  0x71   :  { %1144 = vmatmul.msk.f32.gmra.mxu2 %vm143_vm1, %v88_v56  ;;  %1176 = vmatmul.msk.f32.gmra.mxu3 %vm143_vm1, %v120_v57  ;;  %v33_v56 = vld [vmem:[%s2259_s0 + $0xb0] sm:$0xff] }
  0x72   :  { %v65_v57 = vld [vmem:[%s2259_s0 + $0x1b0] sm:$0xff] }
  0x73   :  { %1080 = vmatmul.msk.f32.gmra.mxu0 %vm143_vm1, %v24_v58  ;;  %1112 = vmatmul.msk.f32.gmra.mxu1 %vm143_vm1, %v56_v59 }
  0x79   :  { %1145 = vmatmul.msk.f32.gmra.mxu2 %vm143_vm1, %v89_v60  ;;  %1177 = vmatmul.msk.f32.gmra.mxu3 %vm143_vm1, %v121_v61  ;;  %v98_v60 = vld [vmem:[%s2259_s0 + $0x2b8] sm:$0xff] }
  0x7a   :  { %v130_v61 = vld [vmem:[%s2259_s0 + $0x3b8] sm:$0xff] }
  0x7b   :  { %1081 = vmatmul.msk.f32.gmra.mxu0 %vm143_vm1, %v25_v62  ;;  %1113 = vmatmul.msk.f32.gmra.mxu1 %vm143_vm1, %v57_v63 }
  0x81   :  { %1146 = vmatmul.msk.f32.gmra.mxu2 %vm143_vm1, %v90_v0  ;;  %1178 = vmatmul.msk.f32.gmra.mxu3 %vm143_vm1, %v122_v1  ;;  %v34_v0 = vld [vmem:[%s2259_s0 + $0xb8] sm:$0xff] }
  0x82   :  { %v66_v1 = vld [vmem:[%s2259_s0 + $0x1b8] sm:$0xff] }
  0x83   :  { %1082 = vmatmul.msk.f32.gmra.mxu0 %vm143_vm1, %v26_v2  ;;  %1114 = vmatmul.msk.f32.gmra.mxu1 %vm143_vm1, %v58_v3 }
  0x88   :  { %v549_v6 = vpop.f32.mrf.mxu0  ;;  %v645_v7 = vpop.f32.mrf.mxu1 }
  0x89   :  { %1147 = vmatmul.msk.f32.gmra.mxu2 %vm143_vm1, %v91_v4  ;;  %1179 = vmatmul.msk.f32.gmra.mxu3 %vm143_vm1, %v123_v5  ;;  %934 = vst.msk [vmem:[%s2260_s2] sm:$0xff] %vm933_vm2, %v549_v6  ;;  %v99_v4 = vld [vmem:[%s2259_s0 + $0x2c0] sm:$0xff] }
  0x8a   :  { %966 = vst.msk [vmem:[%s2260_s2 + $0x100] sm:$0xff] %vm933_vm2, %v645_v7  ;;  %v131_v5 = vld [vmem:[%s2259_s0 + $0x3c0] sm:$0xff] }
  0x8b   :  { %1083 = vmatmul.msk.f32.gmra.mxu0 %vm143_vm1, %v27_v8  ;;  %1115 = vmatmul.msk.f32.gmra.mxu1 %vm143_vm1, %v59_v9  ;;  %v35_v8 = vld [vmem:[%s2259_s0 + $0xc0] sm:$0xff] }
  0x8c   :  { %v741_v10 = vpop.f32.mrf.mxu2  ;;  %v837_v11 = vpop.f32.mrf.mxu3  ;;  %v67_v9 = vld [vmem:[%s2259_s0 + $0x1c0] sm:$0xff] }
  0x8d   :  { %998 = vst.msk [vmem:[%s2260_s2 + $0x200] sm:$0xff] %vm933_vm2, %v741_v10 }
  0x8e   :  { %1030 = vst.msk [vmem:[%s2260_s2 + $0x300] sm:$0xff] %vm933_vm2, %v837_v11 }
  0x90   :  { %v552_v14 = vpop.f32.mrf.mxu0  ;;  %v648_v15 = vpop.f32.mrf.mxu1 }
  0x91   :  { %1148 = vmatmul.msk.f32.gmra.mxu2 %vm143_vm1, %v92_v12  ;;  %1180 = vmatmul.msk.f32.gmra.mxu3 %vm143_vm1, %v124_v13  ;;  %935 = vst.msk [vmem:[%s2260_s2 + $0x8] sm:$0xff] %vm933_vm2, %v552_v14  ;;  %v100_v12 = vld [vmem:[%s2259_s0 + $0x2c8] sm:$0xff] }
  0x92   :  { %967 = vst.msk [vmem:[%s2260_s2 + $0x108] sm:$0xff] %vm933_vm2, %v648_v15  ;;  %v132_v13 = vld [vmem:[%s2259_s0 + $0x3c8] sm:$0xff] }
  0x93   :  { %1084 = vmatmul.msk.f32.gmra.mxu0 %vm143_vm1, %v28_v16  ;;  %1116 = vmatmul.msk.f32.gmra.mxu1 %vm143_vm1, %v60_v17  ;;  %v36_v16 = vld [vmem:[%s2259_s0 + $0xc8] sm:$0xff] }
  0x94   :  { %v744_v18 = vpop.f32.mrf.mxu2  ;;  %v840_v19 = vpop.f32.mrf.mxu3  ;;  %v68_v17 = vld [vmem:[%s2259_s0 + $0x1c8] sm:$0xff] }
  0x95   :  { %999 = vst.msk [vmem:[%s2260_s2 + $0x208] sm:$0xff] %vm933_vm2, %v744_v18 }
  0x96   :  { %1031 = vst.msk [vmem:[%s2260_s2 + $0x308] sm:$0xff] %vm933_vm2, %v840_v19 }
  0x98   :  { %v555_v22 = vpop.f32.mrf.mxu0  ;;  %v651_v23 = vpop.f32.mrf.mxu1 }
  0x99   :  { %1149 = vmatmul.msk.f32.gmra.mxu2 %vm143_vm1, %v93_v20  ;;  %1181 = vmatmul.msk.f32.gmra.mxu3 %vm143_vm1, %v125_v21  ;;  %936 = vst.msk [vmem:[%s2260_s2 + $0x10] sm:$0xff] %vm933_vm2, %v555_v22  ;;  %v101_v20 = vld [vmem:[%s2259_s0 + $0x2d0] sm:$0xff] }
  0x9a   :  { %968 = vst.msk [vmem:[%s2260_s2 + $0x110] sm:$0xff] %vm933_vm2, %v651_v23  ;;  %v133_v21 = vld [vmem:[%s2259_s0 + $0x3d0] sm:$0xff] }
  0x9b   :  { %1085 = vmatmul.msk.f32.gmra.mxu0 %vm143_vm1, %v29_v24  ;;  %1117 = vmatmul.msk.f32.gmra.mxu1 %vm143_vm1, %v61_v25  ;;  %v37_v24 = vld [vmem:[%s2259_s0 + $0xd0] sm:$0xff] }
  0x9c   :  { %v747_v26 = vpop.f32.mrf.mxu2  ;;  %v843_v27 = vpop.f32.mrf.mxu3  ;;  %v69_v25 = vld [vmem:[%s2259_s0 + $0x1d0] sm:$0xff] }
  0x9d   :  { %1000 = vst.msk [vmem:[%s2260_s2 + $0x210] sm:$0xff] %vm933_vm2, %v747_v26 }
  0x9e   :  { %1032 = vst.msk [vmem:[%s2260_s2 + $0x310] sm:$0xff] %vm933_vm2, %v843_v27 }
  0xa0   :  { %v558_v30 = vpop.f32.mrf.mxu0  ;;  %v654_v31 = vpop.f32.mrf.mxu1 }
  0xa1   :  { %1150 = vmatmul.msk.f32.gmra.mxu2 %vm143_vm1, %v94_v28  ;;  %1182 = vmatmul.msk.f32.gmra.mxu3 %vm143_vm1, %v126_v29  ;;  %937 = vst.msk [vmem:[%s2260_s2 + $0x18] sm:$0xff] %vm933_vm2, %v558_v30  ;;  %v102_v28 = vld [vmem:[%s2259_s0 + $0x2d8] sm:$0xff] }
  0xa2   :  { %969 = vst.msk [vmem:[%s2260_s2 + $0x118] sm:$0xff] %vm933_vm2, %v654_v31  ;;  %v134_v29 = vld [vmem:[%s2259_s0 + $0x3d8] sm:$0xff] }
  0xa3   :  { %1086 = vmatmul.msk.f32.gmra.mxu0 %vm143_vm1, %v30_v32  ;;  %1118 = vmatmul.msk.f32.gmra.mxu1 %vm143_vm1, %v62_v33  ;;  %v38_v32 = vld [vmem:[%s2259_s0 + $0xd8] sm:$0xff] }
  0xa4   :  { %v750_v34 = vpop.f32.mrf.mxu2  ;;  %v846_v35 = vpop.f32.mrf.mxu3  ;;  %v70_v33 = vld [vmem:[%s2259_s0 + $0x1d8] sm:$0xff] }
  0xa5   :  { %1001 = vst.msk [vmem:[%s2260_s2 + $0x218] sm:$0xff] %vm933_vm2, %v750_v34 }
  0xa6   :  { %1033 = vst.msk [vmem:[%s2260_s2 + $0x318] sm:$0xff] %vm933_vm2, %v846_v35 }
  0xa8   :  { %v561_v38 = vpop.f32.mrf.mxu0  ;;  %v657_v39 = vpop.f32.mrf.mxu1 }
  0xa9   :  { %1151 = vmatmul.msk.f32.gmra.mxu2 %vm143_vm1, %v95_v36  ;;  %1183 = vmatmul.msk.f32.gmra.mxu3 %vm143_vm1, %v127_v37  ;;  %938 = vst.msk [vmem:[%s2260_s2 + $0x20] sm:$0xff] %vm933_vm2, %v561_v38  ;;  %v103_v36 = vld [vmem:[%s2259_s0 + $0x2e0] sm:$0xff] }
  0xaa   :  { %970 = vst.msk [vmem:[%s2260_s2 + $0x120] sm:$0xff] %vm933_vm2, %v657_v39  ;;  %v135_v37 = vld [vmem:[%s2259_s0 + $0x3e0] sm:$0xff] }
  0xab   :  { %1087 = vmatmul.msk.f32.gmra.mxu0 %vm143_vm1, %v31_v40  ;;  %1119 = vmatmul.msk.f32.gmra.mxu1 %vm143_vm1, %v63_v41  ;;  %v39_v40 = vld [vmem:[%s2259_s0 + $0xe0] sm:$0xff] }
  0xac   :  { %v753_v42 = vpop.f32.mrf.mxu2  ;;  %v849_v43 = vpop.f32.mrf.mxu3  ;;  %v71_v41 = vld [vmem:[%s2259_s0 + $0x1e0] sm:$0xff] }
  0xad   :  { %1002 = vst.msk [vmem:[%s2260_s2 + $0x220] sm:$0xff] %vm933_vm2, %v753_v42 }
  0xae   :  { %1034 = vst.msk [vmem:[%s2260_s2 + $0x320] sm:$0xff] %vm933_vm2, %v849_v43 }
  0xb0   :  { %v564_v46 = vpop.f32.mrf.mxu0  ;;  %v660_v47 = vpop.f32.mrf.mxu1 }
  0xb1   :  { %1152 = vmatmul.msk.f32.gmra.mxu2 %vm143_vm1, %v96_v44  ;;  %1184 = vmatmul.msk.f32.gmra.mxu3 %vm143_vm1, %v128_v45  ;;  %939 = vst.msk [vmem:[%s2260_s2 + $0x28] sm:$0xff] %vm933_vm2, %v564_v46  ;;  %v104_v44 = vld [vmem:[%s2259_s0 + $0x2e8] sm:$0xff] }
  0xb2   :  { %971 = vst.msk [vmem:[%s2260_s2 + $0x128] sm:$0xff] %vm933_vm2, %v660_v47  ;;  %v136_v45 = vld [vmem:[%s2259_s0 + $0x3e8] sm:$0xff] }
  0xb3   :  { %1088 = vmatmul.msk.f32.gmra.mxu0 %vm143_vm1, %v32_v48  ;;  %1120 = vmatmul.msk.f32.gmra.mxu1 %vm143_vm1, %v64_v49  ;;  %v40_v48 = vld [vmem:[%s2259_s0 + $0xe8] sm:$0xff] }
  0xb4   :  { %v756_v50 = vpop.f32.mrf.mxu2  ;;  %v852_v51 = vpop.f32.mrf.mxu3  ;;  %v72_v49 = vld [vmem:[%s2259_s0 + $0x1e8] sm:$0xff] }
  0xb5   :  { %1003 = vst.msk [vmem:[%s2260_s2 + $0x228] sm:$0xff] %vm933_vm2, %v756_v50 }
  0xb6   :  { %1035 = vst.msk [vmem:[%s2260_s2 + $0x328] sm:$0xff] %vm933_vm2, %v852_v51 }
  0xb8   :  { %v567_v54 = vpop.f32.mrf.mxu0  ;;  %v663_v55 = vpop.f32.mrf.mxu1 }
  0xb9   :  { %1153 = vmatmul.msk.f32.gmra.mxu2 %vm143_vm1, %v97_v52  ;;  %1185 = vmatmul.msk.f32.gmra.mxu3 %vm143_vm1, %v129_v53  ;;  %940 = vst.msk [vmem:[%s2260_s2 + $0x30] sm:$0xff] %vm933_vm2, %v567_v54  ;;  %v105_v52 = vld [vmem:[%s2259_s0 + $0x2f0] sm:$0xff] }
  0xba   :  { %972 = vst.msk [vmem:[%s2260_s2 + $0x130] sm:$0xff] %vm933_vm2, %v663_v55  ;;  %v137_v53 = vld [vmem:[%s2259_s0 + $0x3f0] sm:$0xff] }
  0xbb   :  { %1089 = vmatmul.msk.f32.gmra.mxu0 %vm143_vm1, %v33_v56  ;;  %1121 = vmatmul.msk.f32.gmra.mxu1 %vm143_vm1, %v65_v57  ;;  %v41_v56 = vld [vmem:[%s2259_s0 + $0xf0] sm:$0xff] }
  0xbc   :  { %v759_v58 = vpop.f32.mrf.mxu2  ;;  %v855_v59 = vpop.f32.mrf.mxu3  ;;  %v73_v57 = vld [vmem:[%s2259_s0 + $0x1f0] sm:$0xff] }
  0xbd   :  { %1004 = vst.msk [vmem:[%s2260_s2 + $0x230] sm:$0xff] %vm933_vm2, %v759_v58 }
  0xbe   :  { %1036 = vst.msk [vmem:[%s2260_s2 + $0x330] sm:$0xff] %vm933_vm2, %v855_v59 }
  0xc0   :  { %v570_v62 = vpop.f32.mrf.mxu0  ;;  %v666_v63 = vpop.f32.mrf.mxu1 }
  0xc1   :  { %1154 = vmatmul.msk.f32.gmra.mxu2 %vm143_vm1, %v98_v60  ;;  %1186 = vmatmul.msk.f32.gmra.mxu3 %vm143_vm1, %v130_v61  ;;  %941 = vst.msk [vmem:[%s2260_s2 + $0x38] sm:$0xff] %vm933_vm2, %v570_v62  ;;  %v106_v60 = vld [vmem:[%s2259_s0 + $0x2f8] sm:$0xff] }
  0xc2   :  { %973 = vst.msk [vmem:[%s2260_s2 + $0x138] sm:$0xff] %vm933_vm2, %v666_v63  ;;  %v138_v61 = vld [vmem:[%s2259_s0 + $0x3f8] sm:$0xff] }
  0xc3   :  { %1090 = vmatmul.msk.f32.gmra.mxu0 %vm143_vm1, %v34_v0  ;;  %1122 = vmatmul.msk.f32.gmra.mxu1 %vm143_vm1, %v66_v1  ;;  %v42_v0 = vld [vmem:[%s2259_s0 + $0xf8] sm:$0xff] }
  0xc4   :  { %v762_v2 = vpop.f32.mrf.mxu2  ;;  %v858_v3 = vpop.f32.mrf.mxu3  ;;  %v74_v1 = vld [vmem:[%s2259_s0 + $0x1f8] sm:$0xff] }
  0xc5   :  { %1005 = vst.msk [vmem:[%s2260_s2 + $0x238] sm:$0xff] %vm933_vm2, %v762_v2 }
  0xc6   :  { %1037 = vst.msk [vmem:[%s2260_s2 + $0x338] sm:$0xff] %vm933_vm2, %v858_v3 }
  0xc8   :  { %v573_v6 = vpop.f32.mrf.mxu0  ;;  %v669_v7 = vpop.f32.mrf.mxu1 }
  0xc9   :  { %1155 = vmatmul.msk.f32.gmra.mxu2 %vm143_vm1, %v99_v4  ;;  %1187 = vmatmul.msk.f32.gmra.mxu3 %vm143_vm1, %v131_v5  ;;  %942 = vst.msk [vmem:[%s2260_s2 + $0x40] sm:$0xff] %vm933_vm2, %v573_v6 }
  0xca   :  { %974 = vst.msk [vmem:[%s2260_s2 + $0x140] sm:$0xff] %vm933_vm2, %v669_v7 }
  0xcb   :  { %1091 = vmatmul.msk.f32.gmra.mxu0 %vm143_vm1, %v35_v8  ;;  %1123 = vmatmul.msk.f32.gmra.mxu1 %vm143_vm1, %v67_v9 }
  0xcc   :  { %v765_v10 = vpop.f32.mrf.mxu2  ;;  %v861_v11 = vpop.f32.mrf.mxu3 }
  0xcd   :  { %1006 = vst.msk [vmem:[%s2260_s2 + $0x240] sm:$0xff] %vm933_vm2, %v765_v10 }
  0xce   :  { %1038 = vst.msk [vmem:[%s2260_s2 + $0x340] sm:$0xff] %vm933_vm2, %v861_v11 }
  0xd0   :  { %v576_v14 = vpop.f32.mrf.mxu0  ;;  %v672_v15 = vpop.f32.mrf.mxu1 }
  0xd1   :  { %1156 = vmatmul.msk.f32.gmra.mxu2 %vm143_vm1, %v100_v12  ;;  %1188 = vmatmul.msk.f32.gmra.mxu3 %vm143_vm1, %v132_v13  ;;  %943 = vst.msk [vmem:[%s2260_s2 + $0x48] sm:$0xff] %vm933_vm2, %v576_v14 }
  0xd2   :  { %975 = vst.msk [vmem:[%s2260_s2 + $0x148] sm:$0xff] %vm933_vm2, %v672_v15 }
  0xd3   :  { %1092 = vmatmul.msk.f32.gmra.mxu0 %vm143_vm1, %v36_v16  ;;  %1124 = vmatmul.msk.f32.gmra.mxu1 %vm143_vm1, %v68_v17 }
  0xd4   :  { %v768_v18 = vpop.f32.mrf.mxu2  ;;  %v864_v19 = vpop.f32.mrf.mxu3 }
  0xd5   :  { %1007 = vst.msk [vmem:[%s2260_s2 + $0x248] sm:$0xff] %vm933_vm2, %v768_v18 }
  0xd6   :  { %1039 = vst.msk [vmem:[%s2260_s2 + $0x348] sm:$0xff] %vm933_vm2, %v864_v19 }
  0xd8   :  { %v579_v22 = vpop.f32.mrf.mxu0  ;;  %v675_v23 = vpop.f32.mrf.mxu1 }
  0xd9   :  { %1157 = vmatmul.msk.f32.gmra.mxu2 %vm143_vm1, %v101_v20  ;;  %1189 = vmatmul.msk.f32.gmra.mxu3 %vm143_vm1, %v133_v21  ;;  %944 = vst.msk [vmem:[%s2260_s2 + $0x50] sm:$0xff] %vm933_vm2, %v579_v22 }
  0xda   :  { %976 = vst.msk [vmem:[%s2260_s2 + $0x150] sm:$0xff] %vm933_vm2, %v675_v23 }
  0xdb   :  { %1093 = vmatmul.msk.f32.gmra.mxu0 %vm143_vm1, %v37_v24  ;;  %1125 = vmatmul.msk.f32.gmra.mxu1 %vm143_vm1, %v69_v25 }
  0xdc   :  { %v771_v26 = vpop.f32.mrf.mxu2  ;;  %v867_v27 = vpop.f32.mrf.mxu3 }
  0xdd   :  { %1008 = vst.msk [vmem:[%s2260_s2 + $0x250] sm:$0xff] %vm933_vm2, %v771_v26 }
  0xde   :  { %1040 = vst.msk [vmem:[%s2260_s2 + $0x350] sm:$0xff] %vm933_vm2, %v867_v27 }
  0xe0   :  { %v582_v30 = vpop.f32.mrf.mxu0  ;;  %v678_v31 = vpop.f32.mrf.mxu1 }
  0xe1   :  { %1158 = vmatmul.msk.f32.gmra.mxu2 %vm143_vm1, %v102_v28  ;;  %1190 = vmatmul.msk.f32.gmra.mxu3 %vm143_vm1, %v134_v29  ;;  %945 = vst.msk [vmem:[%s2260_s2 + $0x58] sm:$0xff] %vm933_vm2, %v582_v30 }
  0xe2   :  { %977 = vst.msk [vmem:[%s2260_s2 + $0x158] sm:$0xff] %vm933_vm2, %v678_v31 }
  0xe3   :  { %1094 = vmatmul.msk.f32.gmra.mxu0 %vm143_vm1, %v38_v32  ;;  %1126 = vmatmul.msk.f32.gmra.mxu1 %vm143_vm1, %v70_v33 }
  0xe4   :  { %v774_v34 = vpop.f32.mrf.mxu2  ;;  %v870_v35 = vpop.f32.mrf.mxu3 }
  0xe5   :  { %1009 = vst.msk [vmem:[%s2260_s2 + $0x258] sm:$0xff] %vm933_vm2, %v774_v34 }
  0xe6   :  { %1041 = vst.msk [vmem:[%s2260_s2 + $0x358] sm:$0xff] %vm933_vm2, %v870_v35 }
  0xe8   :  { %v585_v38 = vpop.f32.mrf.mxu0  ;;  %v681_v39 = vpop.f32.mrf.mxu1 }
  0xe9   :  { %1159 = vmatmul.msk.f32.gmra.mxu2 %vm143_vm1, %v103_v36  ;;  %1191 = vmatmul.msk.f32.gmra.mxu3 %vm143_vm1, %v135_v37  ;;  %946 = vst.msk [vmem:[%s2260_s2 + $0x60] sm:$0xff] %vm933_vm2, %v585_v38 }
  0xea   :  { %978 = vst.msk [vmem:[%s2260_s2 + $0x160] sm:$0xff] %vm933_vm2, %v681_v39 }
  0xeb   :  { %1095 = vmatmul.msk.f32.gmra.mxu0 %vm143_vm1, %v39_v40  ;;  %1127 = vmatmul.msk.f32.gmra.mxu1 %vm143_vm1, %v71_v41 }
  0xec   :  { %v777_v42 = vpop.f32.mrf.mxu2  ;;  %v873_v43 = vpop.f32.mrf.mxu3 }
  0xed   :  { %1010 = vst.msk [vmem:[%s2260_s2 + $0x260] sm:$0xff] %vm933_vm2, %v777_v42 }
  0xee   :  { %1042 = vst.msk [vmem:[%s2260_s2 + $0x360] sm:$0xff] %vm933_vm2, %v873_v43 }
  0xf0   :  { %v588_v46 = vpop.f32.mrf.mxu0  ;;  %v684_v47 = vpop.f32.mrf.mxu1 }
  0xf1   :  { %1160 = vmatmul.msk.f32.gmra.mxu2 %vm143_vm1, %v104_v44  ;;  %1192 = vmatmul.msk.f32.gmra.mxu3 %vm143_vm1, %v136_v45  ;;  %947 = vst.msk [vmem:[%s2260_s2 + $0x68] sm:$0xff] %vm933_vm2, %v588_v46 }
  0xf2   :  { %979 = vst.msk [vmem:[%s2260_s2 + $0x168] sm:$0xff] %vm933_vm2, %v684_v47 }
  0xf3   :  { %1096 = vmatmul.msk.f32.gmra.mxu0 %vm143_vm1, %v40_v48  ;;  %1128 = vmatmul.msk.f32.gmra.mxu1 %vm143_vm1, %v72_v49 }
  0xf4   :  { %v780_v50 = vpop.f32.mrf.mxu2  ;;  %v876_v51 = vpop.f32.mrf.mxu3 }
  0xf5   :  { %1011 = vst.msk [vmem:[%s2260_s2 + $0x268] sm:$0xff] %vm933_vm2, %v780_v50 }
  0xf6   :  { %1043 = vst.msk [vmem:[%s2260_s2 + $0x368] sm:$0xff] %vm933_vm2, %v876_v51 }
  0xf8   :  { %v591_v54 = vpop.f32.mrf.mxu0  ;;  %v687_v55 = vpop.f32.mrf.mxu1 }
  0xf9   :  { %1161 = vmatmul.msk.f32.gmra.mxu2 %vm143_vm1, %v105_v52  ;;  %1193 = vmatmul.msk.f32.gmra.mxu3 %vm143_vm1, %v137_v53  ;;  %948 = vst.msk [vmem:[%s2260_s2 + $0x70] sm:$0xff] %vm933_vm2, %v591_v54 }
  0xfa   :  { %980 = vst.msk [vmem:[%s2260_s2 + $0x170] sm:$0xff] %vm933_vm2, %v687_v55 }
  0xfb   :  { %1097 = vmatmul.msk.f32.gmra.mxu0 %vm143_vm1, %v41_v56  ;;  %1129 = vmatmul.msk.f32.gmra.mxu1 %vm143_vm1, %v73_v57 }
  0xfc   :  { %v783_v58 = vpop.f32.mrf.mxu2  ;;  %v879_v59 = vpop.f32.mrf.mxu3 }
  0xfd   :  { %1012 = vst.msk [vmem:[%s2260_s2 + $0x270] sm:$0xff] %vm933_vm2, %v783_v58 }
  0xfe   :  { %1044 = vst.msk [vmem:[%s2260_s2 + $0x370] sm:$0xff] %vm933_vm2, %v879_v59 }
 0x100   :  { %v594_v62 = vpop.f32.mrf.mxu0  ;;  %v690_v63 = vpop.f32.mrf.mxu1 }
 0x101   :  { %1162 = vmatmul.msk.f32.gmra.mxu2 %vm143_vm1, %v106_v60  ;;  %1194 = vmatmul.msk.f32.gmra.mxu3 %vm143_vm1, %v138_v61  ;;  %949 = vst.msk [vmem:[%s2260_s2 + $0x78] sm:$0xff] %vm933_vm2, %v594_v62 }
 0x102   :  { %981 = vst.msk [vmem:[%s2260_s2 + $0x178] sm:$0xff] %vm933_vm2, %v690_v63 }
 0x103   :  { %1098 = vmatmul.msk.f32.gmra.mxu0 %vm143_vm1, %v42_v0  ;;  %1130 = vmatmul.msk.f32.gmra.mxu1 %vm143_vm1, %v74_v1 }
 0x104   :  { %v786_v2 = vpop.f32.mrf.mxu2  ;;  %v882_v3 = vpop.f32.mrf.mxu3 }
 0x105   :  { %1013 = vst.msk [vmem:[%s2260_s2 + $0x278] sm:$0xff] %vm933_vm2, %v786_v2 }
 0x106   :  { %1045 = vst.msk [vmem:[%s2260_s2 + $0x378] sm:$0xff] %vm933_vm2, %v882_v3 }
 0x108   :  { %v597_v4 = vpop.f32.mrf.mxu0  ;;  %v693_v5 = vpop.f32.mrf.mxu1 }
 0x109   :  { %950 = vst.msk [vmem:[%s2260_s2 + $0x80] sm:$0xff] %vm933_vm2, %v597_v4 }
 0x10a   :  { %982 = vst.msk [vmem:[%s2260_s2 + $0x180] sm:$0xff] %vm933_vm2, %v693_v5 }
 0x10c   :  { %v789_v6 = vpop.f32.mrf.mxu2  ;;  %v885_v7 = vpop.f32.mrf.mxu3 }
 0x10d   :  { %1014 = vst.msk [vmem:[%s2260_s2 + $0x280] sm:$0xff] %vm933_vm2, %v789_v6 }
 0x10e   :  { %1046 = vst.msk [vmem:[%s2260_s2 + $0x380] sm:$0xff] %vm933_vm2, %v885_v7 }
 0x110   :  { %v600_v8 = vpop.f32.mrf.mxu0  ;;  %v696_v9 = vpop.f32.mrf.mxu1 }
 0x111   :  { %951 = vst.msk [vmem:[%s2260_s2 + $0x88] sm:$0xff] %vm933_vm2, %v600_v8 }
 0x112   :  { %983 = vst.msk [vmem:[%s2260_s2 + $0x188] sm:$0xff] %vm933_vm2, %v696_v9 }
 0x114   :  { %v792_v10 = vpop.f32.mrf.mxu2  ;;  %v888_v11 = vpop.f32.mrf.mxu3 }
 0x115   :  { %1015 = vst.msk [vmem:[%s2260_s2 + $0x288] sm:$0xff] %vm933_vm2, %v792_v10 }
 0x116   :  { %1047 = vst.msk [vmem:[%s2260_s2 + $0x388] sm:$0xff] %vm933_vm2, %v888_v11 }
 0x118   :  { %v603_v12 = vpop.f32.mrf.mxu0  ;;  %v699_v13 = vpop.f32.mrf.mxu1 }
 0x119   :  { %952 = vst.msk [vmem:[%s2260_s2 + $0x90] sm:$0xff] %vm933_vm2, %v603_v12 }
 0x11a   :  { %984 = vst.msk [vmem:[%s2260_s2 + $0x190] sm:$0xff] %vm933_vm2, %v699_v13 }
 0x11c   :  { %v795_v14 = vpop.f32.mrf.mxu2  ;;  %v891_v15 = vpop.f32.mrf.mxu3 }
 0x11d   :  { %1016 = vst.msk [vmem:[%s2260_s2 + $0x290] sm:$0xff] %vm933_vm2, %v795_v14 }
 0x11e   :  { %1048 = vst.msk [vmem:[%s2260_s2 + $0x390] sm:$0xff] %vm933_vm2, %v891_v15 }
 0x120   :  { %v606_v16 = vpop.f32.mrf.mxu0  ;;  %v702_v17 = vpop.f32.mrf.mxu1 }
 0x121   :  { %953 = vst.msk [vmem:[%s2260_s2 + $0x98] sm:$0xff] %vm933_vm2, %v606_v16 }
 0x122   :  { %985 = vst.msk [vmem:[%s2260_s2 + $0x198] sm:$0xff] %vm933_vm2, %v702_v17 }
 0x124   :  { %v798_v18 = vpop.f32.mrf.mxu2  ;;  %v894_v19 = vpop.f32.mrf.mxu3 }
 0x125   :  { %1017 = vst.msk [vmem:[%s2260_s2 + $0x298] sm:$0xff] %vm933_vm2, %v798_v18 }
 0x126   :  { %1049 = vst.msk [vmem:[%s2260_s2 + $0x398] sm:$0xff] %vm933_vm2, %v894_v19 }
 0x128   :  { %v609_v20 = vpop.f32.mrf.mxu0  ;;  %v705_v21 = vpop.f32.mrf.mxu1 }
 0x129   :  { %954 = vst.msk [vmem:[%s2260_s2 + $0xa0] sm:$0xff] %vm933_vm2, %v609_v20 }
 0x12a   :  { %986 = vst.msk [vmem:[%s2260_s2 + $0x1a0] sm:$0xff] %vm933_vm2, %v705_v21 }
 0x12c   :  { %v801_v22 = vpop.f32.mrf.mxu2  ;;  %v897_v23 = vpop.f32.mrf.mxu3 }
 0x12d   :  { %1018 = vst.msk [vmem:[%s2260_s2 + $0x2a0] sm:$0xff] %vm933_vm2, %v801_v22 }
 0x12e   :  { %1050 = vst.msk [vmem:[%s2260_s2 + $0x3a0] sm:$0xff] %vm933_vm2, %v897_v23 }
 0x130   :  { %v612_v24 = vpop.f32.mrf.mxu0  ;;  %v708_v25 = vpop.f32.mrf.mxu1 }
 0x131   :  { %955 = vst.msk [vmem:[%s2260_s2 + $0xa8] sm:$0xff] %vm933_vm2, %v612_v24 }
 0x132   :  { %987 = vst.msk [vmem:[%s2260_s2 + $0x1a8] sm:$0xff] %vm933_vm2, %v708_v25 }
 0x134   :  { %v804_v26 = vpop.f32.mrf.mxu2  ;;  %v900_v27 = vpop.f32.mrf.mxu3 }
 0x135   :  { %1019 = vst.msk [vmem:[%s2260_s2 + $0x2a8] sm:$0xff] %vm933_vm2, %v804_v26 }
 0x136   :  { %1051 = vst.msk [vmem:[%s2260_s2 + $0x3a8] sm:$0xff] %vm933_vm2, %v900_v27 }
 0x138   :  { %v615_v28 = vpop.f32.mrf.mxu0  ;;  %v711_v29 = vpop.f32.mrf.mxu1 }
 0x139   :  { %956 = vst.msk [vmem:[%s2260_s2 + $0xb0] sm:$0xff] %vm933_vm2, %v615_v28 }
 0x13a   :  { %988 = vst.msk [vmem:[%s2260_s2 + $0x1b0] sm:$0xff] %vm933_vm2, %v711_v29 }
 0x13c   :  { %v807_v30 = vpop.f32.mrf.mxu2  ;;  %v903_v31 = vpop.f32.mrf.mxu3 }
 0x13d   :  { %1020 = vst.msk [vmem:[%s2260_s2 + $0x2b0] sm:$0xff] %vm933_vm2, %v807_v30 }
 0x13e   :  { %1052 = vst.msk [vmem:[%s2260_s2 + $0x3b0] sm:$0xff] %vm933_vm2, %v903_v31 }
 0x140   :  { %v618_v32 = vpop.f32.mrf.mxu0  ;;  %v714_v33 = vpop.f32.mrf.mxu1 }
 0x141   :  { %957 = vst.msk [vmem:[%s2260_s2 + $0xb8] sm:$0xff] %vm933_vm2, %v618_v32 }
 0x142   :  { %989 = vst.msk [vmem:[%s2260_s2 + $0x1b8] sm:$0xff] %vm933_vm2, %v714_v33 }
 0x144   :  { %v810_v34 = vpop.f32.mrf.mxu2  ;;  %v906_v35 = vpop.f32.mrf.mxu3 }
 0x145   :  { %1021 = vst.msk [vmem:[%s2260_s2 + $0x2b8] sm:$0xff] %vm933_vm2, %v810_v34 }
 0x146   :  { %1053 = vst.msk [vmem:[%s2260_s2 + $0x3b8] sm:$0xff] %vm933_vm2, %v906_v35 }
 0x148   :  { %v621_v36 = vpop.f32.mrf.mxu0  ;;  %v717_v37 = vpop.f32.mrf.mxu1 }
 0x149   :  { %958 = vst.msk [vmem:[%s2260_s2 + $0xc0] sm:$0xff] %vm933_vm2, %v621_v36 }
 0x14a   :  { %990 = vst.msk [vmem:[%s2260_s2 + $0x1c0] sm:$0xff] %vm933_vm2, %v717_v37 }
 0x14c   :  { %v813_v38 = vpop.f32.mrf.mxu2  ;;  %v909_v39 = vpop.f32.mrf.mxu3 }
 0x14d   :  { %1022 = vst.msk [vmem:[%s2260_s2 + $0x2c0] sm:$0xff] %vm933_vm2, %v813_v38 }
 0x14e   :  { %1054 = vst.msk [vmem:[%s2260_s2 + $0x3c0] sm:$0xff] %vm933_vm2, %v909_v39 }
 0x150   :  { %v624_v40 = vpop.f32.mrf.mxu0  ;;  %v720_v41 = vpop.f32.mrf.mxu1 }
 0x151   :  { %959 = vst.msk [vmem:[%s2260_s2 + $0xc8] sm:$0xff] %vm933_vm2, %v624_v40 }
 0x152   :  { %991 = vst.msk [vmem:[%s2260_s2 + $0x1c8] sm:$0xff] %vm933_vm2, %v720_v41 }
 0x154   :  { %v816_v42 = vpop.f32.mrf.mxu2  ;;  %v912_v43 = vpop.f32.mrf.mxu3 }
 0x155   :  { %1023 = vst.msk [vmem:[%s2260_s2 + $0x2c8] sm:$0xff] %vm933_vm2, %v816_v42 }
 0x156   :  { %1055 = vst.msk [vmem:[%s2260_s2 + $0x3c8] sm:$0xff] %vm933_vm2, %v912_v43 }
 0x158   :  { %v627_v44 = vpop.f32.mrf.mxu0  ;;  %v723_v45 = vpop.f32.mrf.mxu1 }
 0x159   :  { %960 = vst.msk [vmem:[%s2260_s2 + $0xd0] sm:$0xff] %vm933_vm2, %v627_v44 }
 0x15a   :  { %992 = vst.msk [vmem:[%s2260_s2 + $0x1d0] sm:$0xff] %vm933_vm2, %v723_v45 }
 0x15c   :  { %v819_v46 = vpop.f32.mrf.mxu2  ;;  %v915_v47 = vpop.f32.mrf.mxu3 }
 0x15d   :  { %1024 = vst.msk [vmem:[%s2260_s2 + $0x2d0] sm:$0xff] %vm933_vm2, %v819_v46 }
 0x15e   :  { %1056 = vst.msk [vmem:[%s2260_s2 + $0x3d0] sm:$0xff] %vm933_vm2, %v915_v47 }
 0x160   :  { %v630_v48 = vpop.f32.mrf.mxu0  ;;  %v726_v49 = vpop.f32.mrf.mxu1 }
 0x161   :  { %961 = vst.msk [vmem:[%s2260_s2 + $0xd8] sm:$0xff] %vm933_vm2, %v630_v48 }
 0x162   :  { %993 = vst.msk [vmem:[%s2260_s2 + $0x1d8] sm:$0xff] %vm933_vm2, %v726_v49 }
 0x164   :  { %v822_v50 = vpop.f32.mrf.mxu2  ;;  %v918_v51 = vpop.f32.mrf.mxu3 }
 0x165   :  { %1025 = vst.msk [vmem:[%s2260_s2 + $0x2d8] sm:$0xff] %vm933_vm2, %v822_v50 }
 0x166   :  { %1057 = vst.msk [vmem:[%s2260_s2 + $0x3d8] sm:$0xff] %vm933_vm2, %v918_v51 }
 0x168   :  { %v633_v52 = vpop.f32.mrf.mxu0  ;;  %v729_v53 = vpop.f32.mrf.mxu1 }
 0x169   :  { %962 = vst.msk [vmem:[%s2260_s2 + $0xe0] sm:$0xff] %vm933_vm2, %v633_v52 }
 0x16a   :  { %994 = vst.msk [vmem:[%s2260_s2 + $0x1e0] sm:$0xff] %vm933_vm2, %v729_v53 }
 0x16c   :  { %v825_v54 = vpop.f32.mrf.mxu2  ;;  %v921_v55 = vpop.f32.mrf.mxu3 }
 0x16d   :  { %1026 = vst.msk [vmem:[%s2260_s2 + $0x2e0] sm:$0xff] %vm933_vm2, %v825_v54 }
 0x16e   :  { %1058 = vst.msk [vmem:[%s2260_s2 + $0x3e0] sm:$0xff] %vm933_vm2, %v921_v55 }
 0x170   :  { %v636_v56 = vpop.f32.mrf.mxu0  ;;  %v732_v57 = vpop.f32.mrf.mxu1 }
 0x171   :  { %963 = vst.msk [vmem:[%s2260_s2 + $0xe8] sm:$0xff] %vm933_vm2, %v636_v56 }
 0x172   :  { %995 = vst.msk [vmem:[%s2260_s2 + $0x1e8] sm:$0xff] %vm933_vm2, %v732_v57 }
 0x174   :  { %v828_v58 = vpop.f32.mrf.mxu2  ;;  %v924_v59 = vpop.f32.mrf.mxu3 }
 0x175   :  { %1027 = vst.msk [vmem:[%s2260_s2 + $0x2e8] sm:$0xff] %vm933_vm2, %v828_v58 }
 0x176   :  { %1059 = vst.msk [vmem:[%s2260_s2 + $0x3e8] sm:$0xff] %vm933_vm2, %v924_v59 }
 0x178   :  { %v639_v60 = vpop.f32.mrf.mxu0  ;;  %v735_v61 = vpop.f32.mrf.mxu1 }
 0x179   :  { %964 = vst.msk [vmem:[%s2260_s2 + $0xf0] sm:$0xff] %vm933_vm2, %v639_v60 }
 0x17a   :  { %996 = vst.msk [vmem:[%s2260_s2 + $0x1f0] sm:$0xff] %vm933_vm2, %v735_v61 }
 0x17c   :  { %v831_v62 = vpop.f32.mrf.mxu2  ;;  %v927_v63 = vpop.f32.mrf.mxu3 }
 0x17d   :  { %1028 = vst.msk [vmem:[%s2260_s2 + $0x2f0] sm:$0xff] %vm933_vm2, %v831_v62 }
 0x17e   :  { %1060 = vst.msk [vmem:[%s2260_s2 + $0x3f0] sm:$0xff] %vm933_vm2, %v927_v63 }
 0x180   :  { %v642_v0 = vpop.f32.mrf.mxu0  ;;  %v738_v1 = vpop.f32.mrf.mxu1 }
 0x181   :  { %965 = vst.msk [vmem:[%s2260_s2 + $0xf8] sm:$0xff] %vm933_vm2, %v642_v0 }
 0x182   :  { %997 = vst.msk [vmem:[%s2260_s2 + $0x1f8] sm:$0xff] %vm933_vm2, %v738_v1 }
 0x184   :  { %v834_v2 = vpop.f32.mrf.mxu2  ;;  %v930_v3 = vpop.f32.mrf.mxu3 }
 0x185   :  { %1029 = vst.msk [vmem:[%s2260_s2 + $0x2f8] sm:$0xff] %vm933_vm2, %v834_v2 }
 0x186   :  { %1061 = vst.msk [vmem:[%s2260_s2 + $0x3f8] sm:$0xff] %vm933_vm2, %v930_v3 }

</bundles_post_ra>
